<compile_context>
chip_gen: v6e
topology: v6e:2x2x1
jax: 0.10.0
libtpu: 0.0.40
codegen_flags: <defaults>
</compile_context>

<pallas_src>
import jax
import jax.numpy as jnp
from jax.experimental import pallas as pl
from jax.experimental.pallas import tpu as pltpu


def _round_up(x, m):
    return (x + m - 1) // m * m


def _num_forced_grid_steps():
    """Force >=2 grid steps only on chips whose device has 2 TensorCores (v7x);
    on single-TC v5e/v6e an extra grid step is pure ~0.35us overhead."""
    try:
        kind = jax.devices()[0].device_kind.lower()
    except Exception:
        return 1
    return 2 if "v7" in kind else 1


def _choose_tile_cols(n_cols, min_steps, max_tile_cols):
    """Batch (lane) tile selection:
    - as large as possible (per-step DMA/MXU work is tiny next to the ~0.35us
      fixed per-grid-step overhead), capped at max_tile_cols;
    - a multiple of 128 (lane width) unless a single full-width block is used;
    - >=2 steps only when the chip actually has 2 TensorCores.
    """
    if n_cols <= 128 or (min_steps <= 1 and n_cols <= max_tile_cols):
        return n_cols                          # one full block (always legal)
    n_steps = max(min_steps, pl.cdiv(n_cols, max_tile_cols))
    tile = _round_up(pl.cdiv(n_cols, n_steps), 128)
    return max(128, min(tile, max_tile_cols))


def _cde_func_kernel(t_ref, xt_ref, ampt_ref, phaset_ref, freq_ref,
                     w1t_ref, b1_ref, w2st_ref, b2st_ref, out_ref):
    """One (C, tile) column block of  dX/dt(t) * sum_h f(x)  (batch in lanes).

    All compute, the gating multiply and the output store are lane-dense.
    """
    t = t_ref[0]                                              # SMEM scalar
    freq = freq_ref[...]                                      # (C, 1), f32
    # X.derivative(t), evaluated in-kernel (cos rides the EUP slot).
    dxdt_t = ampt_ref[...] * freq * jnp.cos(freq * t + phaset_ref[...])
    # hidden = tanh(W1^T @ x^T + b1): bf16 MXU operands, f32 accumulate + tanh.
    xt = xt_ref[...].astype(w1t_ref.dtype)
    hid = jnp.tanh(
        jnp.dot(w1t_ref[...], xt, preferred_element_type=jnp.float32)
        + b1_ref[...])                                        # (MLP_H, tile) f32
    # sum_h f(x) = (W2@S)^T @ hidden + b2@S   (selector already folded).
    f_sum = jnp.dot(w2st_ref[...], hid.astype(w2st_ref.dtype),
                    preferred_element_type=jnp.float32) + b2st_ref[...]
    out_ref[...] = (dxdt_t * f_sum).astype(out_ref.dtype)


def prepare_cde_params(raw_params, n_channels, hidden_dim, *,
                       mxu_dtype=jnp.bfloat16):
    """Hoisted out of the per-solver-step path (runs once per model).

    Folds the hidden_dim group-sum selector S (S[c*H+h, c] = 1) into W2 / b2,
    transposes everything into the batch-in-lanes layout and pre-casts the MXU
    operands (accumulation stays f32 in-kernel).
    """
    w1, b1 = raw_params["w1"], raw_params["b1"]
    w2, b2 = raw_params["w2"], raw_params["b2"]
    mlp_hidden = w1.shape[1]
    assert w2.shape == (mlp_hidden, n_channels * hidden_dim)
    w2s = w2.reshape(mlp_hidden, n_channels, hidden_dim).sum(-1)   # == W2 @ S
    b2s = b2.reshape(n_channels, hidden_dim).sum(-1)               # == b2 @ S
    return {
        "w1t": w1.T.astype(mxu_dtype),                             # (MLP_H, C)
        "b1": b1.reshape(mlp_hidden, 1).astype(jnp.float32),       # (MLP_H, 1)
        "w2st": w2s.T.astype(mxu_dtype),                           # (C, MLP_H)
        "b2st": b2s.reshape(n_channels, 1).astype(jnp.float32),    # (C, 1)
    }


def prepare_control_path(raw_path):
    """Hoisted once per trajectory: transpose the fixed control-path
    coefficients so X.derivative(t) is evaluated in-kernel, batch-in-lanes."""
    return {
        "ampt": raw_path["amp"].T.astype(jnp.float32),             # (C, B)
        "phaset": raw_path["phase"].T.astype(jnp.float32),         # (C, B)
        "freq": raw_path["freq"].reshape(-1, 1).astype(jnp.float32),  # (C, 1)
    }


def cde_func_forward_t(t, xt, params, path_t, *, max_tile_cols=4096,
                       min_grid_steps=None, out_dtype=None):
    """Transposed CDEFunc.forward: xt is (C, N), result is (C, N).
    A solver that keeps its state transposed calls this directly (zero
    layout plumbing)."""
    n_ch, n_cols = xt.shape
    mlp_hidden = params["w1t"].shape[0]
    out_dtype = out_dtype or xt.dtype

    if min_grid_steps is None:
        min_grid_steps = _num_forced_grid_steps()
    tile_cols = _choose_tile_cols(n_cols, min_grid_steps, max_tile_cols)
    n_steps = pl.cdiv(n_cols, tile_cols)     # ragged last block: masked by Pallas

    t_arr = jnp.asarray(t, jnp.float32).reshape(1)

    # Advisory cost estimate for the post-fold compute graph.
    flops = 4 * n_cols * n_ch * mlp_hidden + 8 * n_cols * n_ch
    transcendentals = n_cols * (mlp_hidden + n_ch)                 # tanh + cos
    x_bytes = xt.dtype.itemsize
    out_bytes = jnp.dtype(out_dtype).itemsize
    weight_bytes = sum(int(v.size) * v.dtype.itemsize for v in params.values())
    bytes_accessed = (n_cols * n_ch * (x_bytes + 2 * 4 + out_bytes)
                      + 4 * n_ch + weight_bytes)

    # VMEM budget: double-buffered column blocks + resident weights +
    # intermediates, with headroom; far below every generation's limit.
    block_bytes = tile_cols * n_ch * (x_bytes + 2 * 4 + out_bytes)
    inter_bytes = 4 * tile_cols * (mlp_hidden + 2 * n_ch)
    vmem_limit = int(min(
        32 * 1024 * 1024,
        max(4 * 1024 * 1024,
            4 * (2 * block_bytes + 2 * weight_bytes + inter_bytes))))

    col_spec = lambda i: (0, i)        # batch-tiled blocks
    fixed_spec = lambda i: (0, 0)      # grid-invariant blocks

    return pl.pallas_call(
        _cde_func_kernel,
        out_shape=jax.ShapeDtypeStruct((n_ch, n_cols), out_dtype),
        grid_spec=pltpu.PrefetchScalarGridSpec(
            num_scalar_prefetch=0,
            grid=(n_steps,),
            in_specs=[
                pl.BlockSpec(memory_space=pltpu.MemorySpace.SMEM),   # t scalar
                pl.BlockSpec((n_ch, tile_cols), col_spec),           # x^T
                pl.BlockSpec((n_ch, tile_cols), col_spec),           # amp^T
                pl.BlockSpec((n_ch, tile_cols), col_spec),           # phase^T
                pl.BlockSpec((n_ch, 1), fixed_spec),                 # freq
                pl.BlockSpec((mlp_hidden, n_ch), fixed_spec),        # W1^T
                pl.BlockSpec((mlp_hidden, 1), fixed_spec),           # b1
                pl.BlockSpec((n_ch, mlp_hidden), fixed_spec),        # (W2@S)^T
                pl.BlockSpec((n_ch, 1), fixed_spec),                 # b2@S
            ],
            out_specs=pl.BlockSpec((n_ch, tile_cols), col_spec),     # lane-dense
        ),
        compiler_params=pltpu.CompilerParams(
            dimension_semantics=("parallel",),
            vmem_limit_bytes=vmem_limit,
        ),
        cost_estimate=pl.CostEstimate(
            flops=int(flops),
            transcendentals=int(transcendentals),
            bytes_accessed=int(bytes_accessed),
        ),
    )(t_arr, xt, path_t["ampt"], path_t["phaset"], path_t["freq"],
      params["w1t"], params["b1"], params["w2st"], params["b2st"])


def cde_func_forward(t, x, params, path_t, **kwargs):
    """PyTorch-layout CDEFunc.forward: x is (B, C), result is (B, C).
    The two transposes are cheap layout plumbing around the lane-dense kernel."""
    out_t = cde_func_forward_t(t, x.T, params, path_t, out_dtype=x.dtype,
                               **kwargs)
    return out_t.T


# --------------------------- reference / test scaffolding ---------------------


def init_raw_params(key, n_channels, hidden_dim, mlp_hidden):
    ch = n_channels * hidden_dim
    k1, k2, k3, k4 = jax.random.split(key, 4)
    s1 = 1.0 / jnp.sqrt(n_channels)
    s2 = 1.0 / jnp.sqrt(mlp_hidden)
    return {
        "w1": jax.random.uniform(k1, (n_channels, mlp_hidden), jnp.float32, -s1, s1),
        "b1": jax.random.uniform(k2, (mlp_hidden,), jnp.float32, -s1, s1),
        "w2": jax.random.uniform(k3, (mlp_hidden, ch), jnp.float32, -s2, s2),
        "b2": jax.random.uniform(k4, (ch,), jnp.float32, -s2, s2),
    }


def init_control_path(key, batch, n_channels):
    k1, k2, k3 = jax.random.split(key, 3)
    return {
        "amp": jax.random.normal(k1, (batch, n_channels), jnp.float32),
        "freq": jax.random.uniform(k2, (n_channels,), jnp.float32, 0.5, 2.0),
        "phase": jax.random.uniform(k3, (batch, n_channels), jnp.float32, 0.0, 6.28),
    }


def _control_path_derivative(t, path):
    return path["amp"] * path["freq"] * jnp.cos(path["freq"] * t + path["phase"])


def _reference_forward(t, x, raw_params, hidden_dim, path):
    """Pure-JAX reference matching the PyTorch semantics exactly."""
    dxdt = _control_path_derivative(t, path)
    h = jnp.tanh(x @ raw_params["w1"] + raw_params["b1"])
    f = (h @ raw_params["w2"] + raw_params["b2"]).reshape(
        x.shape[0], x.shape[1], hidden_dim)
    return (f * dxdt[..., None]).sum(-1)


if __name__ == "__main__":
    # Small shapes: batch=8, state channels=16, CDE hidden_dim=8, MLP hidden=32.
    B, C, HID, MLP_H = 8, 16, 8, 32
    key = jax.random.PRNGKey(0)
    kx, kp, kc = jax.random.split(key, 3)

    x = jax.random.normal(kx, (B, C), dtype=jnp.float32)
    t = jnp.float32(0.3)
    raw = init_raw_params(kp, C, HID, MLP_H)
    raw_path = init_control_path(kc, B, C)

    params_bf16 = prepare_cde_params(raw, C, HID)                    # once per model
    params_f32 = prepare_cde_params(raw, C, HID, mxu_dtype=jnp.float32)
    path_t = prepare_control_path(raw_path)                          # once per trajectory

    # Check 1: default bf16-MXU path, single full-width block.
    out = jax.block_until_ready(cde_func_forward(t, x, params_bf16, path_t))
    ref = _reference_forward(t, x, raw, HID, raw_path)
    assert out.shape == (B, C)
    assert jnp.allclose(out, ref, atol=5e-2, rtol=5e-2), \
        float(jnp.max(jnp.abs(out - ref)))

    # Check 2: ragged multi-step grid (no host-side padding anymore) with f32
    # MXU operands and a tight tolerance.  Small forced tiles + min 2 steps so
    # the partial last block is exercised on every chip generation.
    B2 = 300
    kx2, kc2 = jax.random.split(jax.random.PRNGKey(1))
    x2 = jax.random.normal(kx2, (B2, C), dtype=jnp.float32)
    raw_path2 = init_control_path(kc2, B2, C)
    path2_t = prepare_control_path(raw_path2)
    out2 = jax.block_until_ready(
        cde_func_forward(t, x2, params_f32, path2_t,
                         max_tile_cols=128, min_grid_steps=2))
    ref2 = _reference_forward(t, x2, raw, HID, raw_path2)
    assert out2.shape == (B2, C)
    assert jnp.allclose(out2, ref2, atol=1e-4, rtol=1e-4), \
        float(jnp.max(jnp.abs(out2 - ref2)))

    print("KERNEL_OK")
</pallas_src>

<mosaic_0001>
module attributes {stable_mosaic.version = 11 : i64} {
  func.func @_cde_func_kernel(%arg0: i32, %arg1: memref<1xf32, #tpu.memory_space<smem>>, %arg2: memref<16x8xf32, #tpu.memory_space<vmem>>, %arg3: memref<16x8xf32, #tpu.memory_space<vmem>>, %arg4: memref<16x8xf32, #tpu.memory_space<vmem>>, %arg5: memref<16x1xf32, #tpu.memory_space<vmem>>, %arg6: memref<32x16xbf16, #tpu.memory_space<vmem>>, %arg7: memref<32x1xf32, #tpu.memory_space<vmem>>, %arg8: memref<16x32xbf16, #tpu.memory_space<vmem>>, %arg9: memref<16x1xf32, #tpu.memory_space<vmem>>, %arg10: memref<16x8xf32, #tpu.memory_space<vmem>>) attributes {dimension_semantics = [#tpu.dimension_semantics<parallel>], iteration_bounds = array<i64: 1>, scalar_prefetch = 0 : i64, scratch_operands = 0 : i64, tpu.core_type = #tpu.core_type<tc>, window_params = [{transform_indices = @transform_0, window_bounds = array<i64: 1>}, {transform_indices = @transform_1, window_bounds = array<i64: 16, 8>}, {transform_indices = @transform_2, window_bounds = array<i64: 16, 8>}, {transform_indices = @transform_3, window_bounds = array<i64: 16, 8>}, {pipeline_mode = #tpu.pipeline_mode<synchronous>, transform_indices = @transform_4, window_bounds = array<i64: 16, 1>}, {pipeline_mode = #tpu.pipeline_mode<synchronous>, transform_indices = @transform_5, window_bounds = array<i64: 32, 16>}, {pipeline_mode = #tpu.pipeline_mode<synchronous>, transform_indices = @transform_6, window_bounds = array<i64: 32, 1>}, {pipeline_mode = #tpu.pipeline_mode<synchronous>, transform_indices = @transform_7, window_bounds = array<i64: 16, 32>}, {pipeline_mode = #tpu.pipeline_mode<synchronous>, transform_indices = @transform_8, window_bounds = array<i64: 16, 1>}, {transform_indices = @transform_9, window_bounds = array<i64: 16, 8>}]} {
    %c0 = arith.constant 0 : index
    %0 = memref.load %arg1[%c0] : memref<1xf32, #tpu.memory_space<smem>>
    %c0_0 = arith.constant 0 : index
    %c0_1 = arith.constant 0 : index
    %1 = vector.load %arg5[%c0_0, %c0_1] : memref<16x1xf32, #tpu.memory_space<vmem>>, vector<16x1xf32>
    %c0_2 = arith.constant 0 : index
    %c0_3 = arith.constant 0 : index
    %2 = vector.load %arg3[%c0_2, %c0_3] : memref<16x8xf32, #tpu.memory_space<vmem>>, vector<16x8xf32>
    %3 = vector.broadcast %1 : vector<16x1xf32> to vector<16x8xf32>
    %4 = arith.mulf %2, %3 : vector<16x8xf32>
    %5 = vector.broadcast %0 : f32 to vector<16x1xf32>
    %6 = arith.mulf %1, %5 : vector<16x1xf32>
    %c0_4 = arith.constant 0 : index
    %c0_5 = arith.constant 0 : index
    %7 = vector.load %arg4[%c0_4, %c0_5] : memref<16x8xf32, #tpu.memory_space<vmem>>, vector<16x8xf32>
    %8 = vector.broadcast %6 : vector<16x1xf32> to vector<16x8xf32>
    %9 = arith.addf %8, %7 : vector<16x8xf32>
    %10 = math.cos %9 : vector<16x8xf32>
    %11 = arith.mulf %4, %10 : vector<16x8xf32>
    %c0_6 = arith.constant 0 : index
    %c0_7 = arith.constant 0 : index
    %12 = vector.load %arg2[%c0_6, %c0_7] : memref<16x8xf32, #tpu.memory_space<vmem>>, vector<16x8xf32>
    %13 = arith.truncf %12 : vector<16x8xf32> to vector<16x8xbf16>
    %c0_8 = arith.constant 0 : index
    %c0_9 = arith.constant 0 : index
    %14 = vector.load %arg6[%c0_8, %c0_9] : memref<32x16xbf16, #tpu.memory_space<vmem>>, vector<32x16xbf16>
    %cst = arith.constant dense<0.000000e+00> : vector<32x8xf32>
    %15 = tpu.matmul %14, %13, %cst {dimension_numbers = #tpu.dot_dimension_numbers<[1], [0], [0], [1], [0, 0, 1, 1], [], []>} : vector<32x16xbf16>, vector<16x8xbf16>, vector<32x8xf32> -> vector<32x8xf32>
    %c0_10 = arith.constant 0 : index
    %c0_11 = arith.constant 0 : index
    %16 = vector.load %arg7[%c0_10, %c0_11] : memref<32x1xf32, #tpu.memory_space<vmem>>, vector<32x1xf32>
    %17 = vector.broadcast %16 : vector<32x1xf32> to vector<32x8xf32>
    %18 = arith.addf %15, %17 : vector<32x8xf32>
    %19 = math.tanh %18 : vector<32x8xf32>
    %c0_12 = arith.constant 0 : index
    %c0_13 = arith.constant 0 : index
    %20 = vector.load %arg8[%c0_12, %c0_13] : memref<16x32xbf16, #tpu.memory_space<vmem>>, vector<16x32xbf16>
    %21 = arith.truncf %19 : vector<32x8xf32> to vector<32x8xbf16>
    %cst_14 = arith.constant dense<0.000000e+00> : vector<16x8xf32>
    %22 = tpu.matmul %20, %21, %cst_14 {dimension_numbers = #tpu.dot_dimension_numbers<[1], [0], [0], [1], [0, 0, 1, 1], [], []>} : vector<16x32xbf16>, vector<32x8xbf16>, vector<16x8xf32> -> vector<16x8xf32>
    %c0_15 = arith.constant 0 : index
    %c0_16 = arith.constant 0 : index
    %23 = vector.load %arg9[%c0_15, %c0_16] : memref<16x1xf32, #tpu.memory_space<vmem>>, vector<16x1xf32>
    %24 = vector.broadcast %23 : vector<16x1xf32> to vector<16x8xf32>
    %25 = arith.addf %22, %24 : vector<16x8xf32>
    %26 = arith.mulf %11, %25 : vector<16x8xf32>
    %c0_17 = arith.constant 0 : index
    %c0_18 = arith.constant 0 : index
    %27 = vector.load %arg10[%c0_17, %c0_18] : memref<16x8xf32, #tpu.memory_space<vmem>>, vector<16x8xf32>
    tpu.vector_store %arg10[%c0_17, %c0_18], %26 {strides = array<i32>} : memref<16x8xf32, #tpu.memory_space<vmem>>, vector<16x8xf32>,
    return
  }
  func.func @transform_0(%arg0: i32) -> i32 {
    %c0_i32 = arith.constant 0 : i32
    %c0_i32_0 = arith.constant 0 : i32
    return %c0_i32 : i32
  }
  func.func @transform_1(%arg0: i32) -> (i32, i32) {
    %c0_i32 = arith.constant 0 : i32
    %c0_i32_0 = arith.constant 0 : i32
    return %c0_i32, %arg0 : i32, i32
  }
  func.func @transform_2(%arg0: i32) -> (i32, i32) {
    %c0_i32 = arith.constant 0 : i32
    %c0_i32_0 = arith.constant 0 : i32
    return %c0_i32, %arg0 : i32, i32
  }
  func.func @transform_3(%arg0: i32) -> (i32, i32) {
    %c0_i32 = arith.constant 0 : i32
    %c0_i32_0 = arith.constant 0 : i32
    return %c0_i32, %arg0 : i32, i32
  }
  func.func @transform_4(%arg0: i32) -> (i32, i32) {
    %c0_i32 = arith.constant 0 : i32
    %c0_i32_0 = arith.constant 0 : i32
    %c0_i32_1 = arith.constant 0 : i32
    return %c0_i32, %c0_i32_0 : i32, i32
  }
  func.func @transform_5(%arg0: i32) -> (i32, i32) {
    %c0_i32 = arith.constant 0 : i32
    %c0_i32_0 = arith.constant 0 : i32
    %c0_i32_1 = arith.constant 0 : i32
    return %c0_i32, %c0_i32_0 : i32, i32
  }
  func.func @transform_6(%arg0: i32) -> (i32, i32) {
    %c0_i32 = arith.constant 0 : i32
    %c0_i32_0 = arith.constant 0 : i32
    %c0_i32_1 = arith.constant 0 : i32
    return %c0_i32, %c0_i32_0 : i32, i32
  }
  func.func @transform_7(%arg0: i32) -> (i32, i32) {
    %c0_i32 = arith.constant 0 : i32
    %c0_i32_0 = arith.constant 0 : i32
    %c0_i32_1 = arith.constant 0 : i32
    return %c0_i32, %c0_i32_0 : i32, i32
  }
  func.func @transform_8(%arg0: i32) -> (i32, i32) {
    %c0_i32 = arith.constant 0 : i32
    %c0_i32_0 = arith.constant 0 : i32
    %c0_i32_1 = arith.constant 0 : i32
    return %c0_i32, %c0_i32_0 : i32, i32
  }
  func.func @transform_9(%arg0: i32) -> (i32, i32) {
    %c0_i32 = arith.constant 0 : i32
    %c0_i32_0 = arith.constant 0 : i32
    return %c0_i32, %arg0 : i32, i32
  }
}

</mosaic_0001>

<bundles_post_ra>
// kernel: tpu_custom_call.1
= control target key start
LH: loop header
LB: loop body
LE: loop exit
PB: predicated region body
PF: predicated region fallthrough
CT: control target
= control target key end

     0   :  { %v524_v0 = vmov 0   ;;  %vm317_vm0 = vcmask 130048   ;;  %v525_v17 = vmov 0.0   ;;  %vm526_vm1 = vmmov 0   ;;  %s779_s6 = inlined_call_operand.vmem [shape: f32[32,1], index: 6, kind: input, shape index: {}]   ;;  %s780_s1 = inlined_call_operand.vmem [shape: f32[16,8], index: 1, kind: input, shape index: {}]   ;;  %s781_s5 = inlined_call_operand.vmem [shape: bf16[32,16], index: 5, kind: input, shape index: {}]   ;;  %s782_s0 = inlined_call_operand.<no memory space> [shape: f32[1], index: 0, kind: input, shape index: {}]   ;;  %s783_s4 = inlined_call_operand.vmem [shape: f32[16,1], index: 4, kind: input, shape index: {}]   ;;  %s784_s8 = inlined_call_operand.vmem [shape: f32[16,1], index: 8, kind: input, shape index: {}]   ;;  %s785_s7 = inlined_call_operand.vmem [shape: bf16[16,32], index: 7, kind: input, shape index: {}]   ;;  %s786_s3 = inlined_call_operand.vmem [shape: f32[16,8], index: 3, kind: input, shape index: {}]   ;;  %s787_s2 = inlined_call_operand.vmem [shape: f32[16,8], index: 2, kind: input, shape index: {}]   ;;  %s788_s9 = inlined_call_operand.vmem [shape: f32[16,8], index: 9, kind: output, shape index: {}]  }
   0x1   :  { %504 = vset.pattern.permute.xlu1 %v524_v0  ;;  %503 = vset.pattern.permute.xlu0 %v524_v0  ;;  %v285_v1 = vld [vmem:[%s779_s6 + $0x10] sm:$0xff]  ;;  %v283_v2 = vld [vmem:[%s779_s6] sm:$0xff]  ;;  %v277_v4 = vld [vmem:[%s780_s1 + $0x8] sm:$0xff]  ;;  %v51_v8 = vstv %s782_s0  ;;  %vm398_vm2 = vcmask 261120   ;;  %v527_v59 = vmov 2102212464  }
   0x2   :  { %v276_v3 = vld [vmem:[%s780_s1] sm:$0xff]  ;;  %299 = vperm.xlu0 %503, %v285_v1   ;;  %289 = vperm.xlu1 %504, %v283_v2   ;;  %v286_v5 = vld [vmem:[%s779_s6 + $0x18] sm:$0xff]  ;;  %v284_v9 = vld [vmem:[%s779_s6 + $0x8] sm:$0xff]  ;;  %v528_v61 = vmov 920167782  }
   0x3   :  { %v278_v6 = vpack.c.bf16 %v277_v4, %v276_v3  ;;  %v505_v7 = vld [vmem:[%s781_s5] sm:$0xff]   ;;  %v506_v10 = vld [vmem:[%s781_s5 + $0x8] sm:$0xff]   ;;  %478 = vmatprep.subr.bf16.mxu1 %v525_v17  ;;  %482 = vmatprep.mubr.msk.bf16.mxu1 %vm526_vm1, %v525_v17  ;;  %v529_v2 = vmov 1326507024  }
   0x4   :  { %474 = vmatprep.mubr.msk.bf16.mxu0 %vm317_vm0, %v505_v7  ;;  %v36_v11 = vld [vmem:[%s783_s4 + $0x8] sm:$0xff]  ;;  %v35_v12 = vld [vmem:[%s783_s4] sm:$0xff] }
   0x5   :  { %472 = vmatprep.subr.bf16.mxu0 %v278_v6  ;;  %v52_v13 = vmul.f32 %v51_v8, %v35_v12  ;;  %v53_v14 = vmul.f32 %v51_v8, %v36_v11  ;;  %v381_v15 = vld [vmem:[%s784_s8] sm:$0xff]  ;;  %v382_v16 = vld [vmem:[%s784_s8 + $0x8] sm:$0xff]  ;;  %v531_v8 = vmov 2475754826  }
   0x6   :  { %473 = vmatpush3.bf16.msra.mxu0 %v278_v6  ;;  %304 = vperm.xlu0 %503, %v286_v5   ;;  %v507_v36 = vld [vmem:[%s785_s7] sm:$0xff]   ;;  %v55_v40 = vld [vmem:[%s786_s3 + $0x8] sm:$0xff]  ;;  %v530_v6 = vmov 683565275  }
   0x7   :  { %294 = vperm.xlu1 %504, %v284_v9   ;;  %v54_v37 = vld [vmem:[%s786_s3] sm:$0xff] }
   0x9   :  { %475 = vmatmul.mubr.msk.bf16.vlgmr.msra.gmra.mxu0 %vm317_vm0, %v506_v10 }
   0xa   :  { %58 = vperm.xlu0 %503, %v52_v13  }
   0xb   :  { %63 = vperm.xlu1 %504, %v53_v14  }
   0xe   :  { %41 = vperm.xlu0 %503, %v35_v12  }
   0xf   :  { %46 = vperm.xlu1 %504, %v36_v11   ;;  %v532_v11 = vmov 2131351028  }
  0x12   :  { %385 = vperm.xlu0 %503, %v381_v15  }
  0x13   :  { %390 = vperm.xlu1 %504, %v382_v16  }
  0x7d   :  { %v300_v18 = vpop.permute.xlu0 %299  ;;  %v290_v19 = vpop.permute.xlu1 %289 }
  0x81   :  { %v305_v23 = vpop.permute.xlu0 %304 }
  0x82   :  { %v295_v26 = vpop.permute.xlu1 %294 }
  0x85   :  { %v59_v38 = vpop.permute.xlu0 %58 }
  0x86   :  { %v630_v39 = vadd.f32 %v59_v38, %v54_v37  ;;  %v64_v41 = vpop.permute.xlu1 %63 }
  0x87   :  { %v635_v42 = vadd.f32 %v64_v41, %v55_v40 }
  0x88   :  { %v71_v43 = vand.u32 2139095040, %v630_v39  ;;  %v68_v56 = vand.u32 2147483647, %v630_v39  ;;  %vm70_vm1 = vcmp.lt.s32.totalorder %v630_v39, 0 }
  0x89   :  { %v174_v44 = vand.u32 2139095040, %v635_v42  ;;  %v171_v57 = vand.u32 2147483647, %v635_v42 }
  0x8a   :  { %v72_v45 = vshrl.u32 %v71_v43, 23  ;;  %v75_v63 = vand.u32 8388607, %v68_v56 }
  0x8b   :  { %v175_v46 = vshrl.u32 %v174_v44, 23  ;;  %v178_v4 = vand.u32 8388607, %v171_v57 }
  0x8c   :  { %v452_v47 = vadd.s32 4294967169, %v72_v45 }
  0x8d   :  { %v456_v48 = vadd.s32 4294967169, %v175_v46  ;;  %v179_v45 = vor.u32 8388608, %v178_v4 }
  0x8e   :  { %v78_v49 = vadd.s32 1, %v452_v47 }
  0x8f   :  { %v181_v50 = vadd.s32 1, %v456_v48 }
  0x90   :  { %vm79_vm3 = vcmp.gt.s32.totalorder %v78_v49, 0 }
  0x91   :  { %v80_v51 = vsel %vm79_vm3, %v78_v49, 0  ;;  %vm182_vm4 = vcmp.gt.s32.totalorder %v181_v50, 0  ;;  %vm173_vm3 = vcmp.lt.s32.totalorder %v635_v42, 0 }
  0x92   :  { %v82_v52 = vand.u32 31, %v80_v51  ;;  %v183_v53 = vsel %vm182_vm4, %v181_v50, 0  ;;  %v648_v0 = vshrl.u32 %v80_v51, 5  ;;  %vm754_vm4 = vcmp.le.f32.partialorder %v171_v57, 0.7853982 }
  0x93   :  { %v185_v54 = vand.u32 31, %v183_v53  ;;  %v653_v5 = vshrl.u32 %v183_v53, 5 }
  0x94   :  { %v639_v55 = vsub.s32 32, %v82_v52  ;;  %v94_v60 = vshll.u32 %v527_v59, %v82_v52  ;;  %v97_v1 = vshll.u32 %v528_v61, %v82_v52  ;;  %v85_v7 = vshll.u32 %v530_v6, %v82_v52 }
  0x95   :  { %v643_v58 = vsub.s32 32, %v185_v54  ;;  %v88_v9 = vshll.u32 %v531_v8, %v82_v52  ;;  %v91_v13 = vshll.u32 %v532_v11, %v82_v52  ;;  %v188_v15 = vshll.u32 %v530_v6, %v185_v54 }
  0x96   :  { %v95_v62 = vshrl.u32 %v528_v61, %v639_v55  ;;  %v98_v3 = vshrl.u32 %v529_v2, %v639_v55  ;;  %v86_v10 = vshrl.u32 %v531_v8, %v639_v55  ;;  %v89_v12 = vshrl.u32 %v532_v11, %v639_v55 }
  0x97   :  { %v92_v14 = vshrl.u32 %v527_v59, %v639_v55  ;;  %v197_v16 = vshll.u32 %v527_v59, %v185_v54  ;;  %vm103_vm5 = vcmp.lt.s32.totalorder %v648_v0, 4  ;;  %vm100_vm6 = vcmp.lt.s32.totalorder %v648_v0, 1 }
  0x98   :  { %vm102_vm7 = vcmp.lt.s32.totalorder %v648_v0, 3  ;;  %vm206_vm8 = vcmp.lt.s32.totalorder %v653_v5, 4  ;;  %vm203_vm9 = vcmp.lt.s32.totalorder %v653_v5, 1  ;;  %vm101_vm10 = vcmp.lt.s32.totalorder %v648_v0, 2 }
  0x99   :  { %vm205_vm11 = vcmp.lt.s32.totalorder %v653_v5, 3  ;;  %vm204_vm12 = vcmp.lt.s32.totalorder %v653_v5, 2  ;;  %v187_v4 = vshrl.u32 %v530_v6, %v643_v58 }
  0xc9   :  { %v476_v20 = vpop.f32.mrf.mxu0 }
  0xca   :  { %v367_v21 = vadd.f32 %v476_v20, %v300_v18  ;;  %v96_v18 = vor.u32 %v95_v62, %v94_v60  ;;  %v201_v20 = vshrl.u32 %v529_v2, %v643_v58  ;;  %v84_v62 = vshrl.u32 %v530_v6, %v639_v55 }
  0xcb   :  { %v358_v22 = vpop.f32.mrf.mxu0 }
  0xcc   :  { %508 = vtanh.f32 %v367_v21  ;;  %v359_v27 = vadd.f32 %v358_v22, %v290_v19  ;;  %v200_v19 = vshll.u32 %v528_v61, %v185_v54  ;;  %v99_v21 = vor.u32 %v98_v3, %v97_v1 }
  0xcd   :  { %v477_v24 = vpop.f32.mrf.mxu0  ;;  %v189_v22 = vshrl.u32 %v531_v8, %v643_v58 }
  0xce   :  { %v370_v25 = vadd.f32 %v477_v24, %v305_v23  ;;  %v191_v23 = vshll.u32 %v531_v8, %v185_v54  ;;  %v192_v24 = vshrl.u32 %v532_v11, %v643_v58 }
  0xcf   :  { %v361_v28 = vpop.f32.mrf.mxu0 }
  0xd0   :  { %510 = vtanh.f32 %v370_v25  ;;  %v362_v29 = vadd.f32 %v361_v28, %v295_v26  ;;  %v194_v25 = vshll.u32 %v532_v11, %v185_v54  ;;  %v195_v26 = vshrl.u32 %v527_v59, %v643_v58 }
  0xd1   :  { %512 = vtanh.f32 %v359_v27  ;;  %v87_v27 = vor.u32 %v86_v10, %v85_v7  ;;  %v90_v28 = vor.u32 %v89_v12, %v88_v9  ;;  %v219_v54 = vshll.u32 %v179_v45, 8 }
  0xd2   :  { %514 = vtanh.f32 %v362_v29  ;;  %v93_v29 = vor.u32 %v92_v14, %v91_v13  ;;  %v196_v37 = vor.u32 %v195_v26, %v194_v25 }
  0xd3   :  { %v108_v38 = vsel %vm100_vm6, %v87_v27, %v90_v28  ;;  %v104_v55 = vsel %vm100_vm6, %v84_v62, %v87_v27 }
  0xd4   :  { %v112_v43 = vsel %vm100_vm6, %v90_v28, %v93_v29  ;;  %v105_v3 = vsel %vm103_vm5, %v93_v29, 2102212464  ;;  %v208_v12 = vsel %vm206_vm8, %v196_v37, 2102212464 }
  0xd5   :  { %v106_v11 = vsel %vm102_vm7, %v90_v28, %v105_v3 }
  0xd6   :  { %v107_v13 = vsel %vm101_vm10, %v104_v55, %v106_v11 }
  0xd9   :  { %v509_v30 = vpop.eup %508 }
  0xdd   :  { %v511_v31 = vpop.eup %510 }
  0xde   :  { %v380_v32 = vpack.c.bf16 %v511_v31, %v509_v30  ;;  %v513_v33 = vpop.eup %512  ;;  %v109_v31 = vsel %vm103_vm5, %v96_v18, 920167782 }
  0xdf   :  { %v515_v34 = vpop.eup %514  ;;  %v110_v40 = vsel %vm102_vm7, %v93_v29, %v109_v31 }
  0xe0   :  { %479 = vmatpush3.bf16.msra.mxu1 %v380_v32  ;;  %v379_v35 = vpack.c.bf16 %v515_v34, %v513_v33  ;;  %v202_v32 = vor.u32 %v201_v20, %v200_v19  ;;  %v76_v33 = vor.u32 8388608, %v75_v63  ;;  %v113_v34 = vsel %vm103_vm5, %v99_v21, 1326507024 }
  0xe1   :  { %480 = vmatprep.subr.bf16.mxu1 %v525_v17  ;;  %v198_v17 = vshrl.u32 %v528_v61, %v643_v58  ;;  %v114_v44 = vsel %vm102_vm7, %v96_v18, %v113_v34  ;;  %v111_v48 = vsel %vm101_vm10, %v108_v38, %v110_v40 }
  0xe2   :  { %v216_v46 = vsel %vm206_vm8, %v202_v32, 1326507024  ;;  %v116_v47 = vshll.u32 %v76_v33, 8  ;;  %v115_v51 = vsel %vm101_vm10, %v112_v43, %v114_v44  ;;  %vm160_vm10 = vweird.f32 %v630_v39 }
  0xe3   :  { %v199_v30 = vor.u32 %v198_v17, %v197_v16 }
  0xe4   :  { %481 = vmatpush3.bf16.msra.mxu1 %v379_v35  ;;  %v190_v35 = vor.u32 %v189_v22, %v188_v15  ;;  %v699_v59 = vmul.u32.u64.low %v116_v47, %v111_v48  ;;  %v700_v60 = vmul.u32.u64.high %v116_v47, %v111_v48, %v699_v59  ;;  %v123_v15 = vmul.u32 %v116_v47, %v107_v13 }
  0xe5   :  { %v212_v41 = vsel %vm206_vm8, %v199_v30, 920167782  ;;  %v217_v53 = vsel %vm205_vm11, %v199_v30, %v216_v46  ;;  %v705_v63 = vmul.u32.u64.low %v116_v47, %v115_v51  ;;  %v706_v1 = vmul.u32.u64.high %v116_v47, %v115_v51, %v705_v63 }
  0xe6   :  { %v213_v50 = vsel %vm205_vm11, %v196_v37, %v212_v41  ;;  %v126_v58 = vadd.s32 1, %v700_v60  ;;  %v207_v6 = vsel %vm203_vm9, %v187_v4, %v190_v35 }
  0xe7   :  { %483 = vmatmul.mubr.msk.bf16.vlgmr.msra.gmra.mxu1 %vm398_vm2, %v507_v36  ;;  %v193_v36 = vor.u32 %v192_v24, %v191_v23  ;;  %vm125_vm13 = vc.u32 %v706_v1, %v699_v59  ;;  %v124_v43 = vadd.s32 %v699_v59, %v706_v1  ;;  %vm744_vm2 = vcmp.le.f32.partialorder %v68_v56, 0.7853982 }
  0xe8   :  { %v127_v18 = vsel %vm125_vm13, %v126_v58, %v700_v60  ;;  %vm445_vm13 = vcmask 64512  }
  0xe9   :  { %v211_v49 = vsel %vm203_vm9, %v190_v35, %v193_v36  ;;  %v215_v52 = vsel %vm203_vm9, %v193_v36, %v196_v37  ;;  %v209_v14 = vsel %vm205_vm11, %v193_v36, %v208_v12  ;;  %v128_v19 = vadd.s32 %v127_v18, %v123_v15 }
  0xea   :  { %v214_v61 = vsel %vm204_vm12, %v211_v49, %v213_v50  ;;  %v218_v2 = vsel %vm204_vm12, %v215_v52, %v217_v53  ;;  %v210_v16 = vsel %vm204_vm12, %v207_v6, %v209_v14  ;;  %vm263_vm12 = vweird.f32 %v635_v42 }
  0xeb   :  { %v713_v7 = vmul.u32.u64.low %v219_v54, %v214_v61  ;;  %v714_v8 = vmul.u32.u64.high %v219_v54, %v214_v61, %v713_v7  ;;  %v716_v9 = vmul.u32.u64.low %v219_v54, %v218_v2  ;;  %v717_v10 = vmul.u32.u64.high %v219_v54, %v218_v2, %v716_v9 }
  0xec   :  { %v226_v0 = vmul.u32 %v219_v54, %v210_v16  ;;  %v129_v22 = vadd.s32 536870912, %v128_v19 }
  0xed   :  { %v229_v17 = vadd.s32 1, %v714_v8  ;;  %vm228_vm14 = vc.u32 %v717_v10, %v713_v7  ;;  %v227_v46 = vadd.s32 %v713_v7, %v717_v10 }
  0xee   :  { %v130_v24 = vshrl.u32 %v129_v22, 30 }
  0xef   :  { %v230_v20 = vsel %vm228_vm14, %v229_v17, %v714_v8 }
  0xf0   :  { %v231_v21 = vadd.s32 %v230_v20, %v226_v0  ;;  %v131_v26 = vshll.u32 %v130_v24, 30  ;;  %v154_v58 = vsub.s32 4, %v130_v24 }
  0xf2   :  { %v232_v23 = vadd.s32 536870912, %v231_v21  ;;  %v132_v28 = vsub.s32 %v128_v19, %v131_v26  ;;  %v155_v6 = vsel %vm70_vm1, %v154_v58, %v130_v24 }
  0xf3   :  { %v157_v16 = vsel %vm744_vm2, 0, %v155_v6 }
  0xf4   :  { %v233_v25 = vshrl.u32 %v232_v23, 30  ;;  %v134_v29 = vsub.s32 0, %v132_v28  ;;  %v161_v18 = vand.u32 3, %v157_v16 }
  0xf6   :  { %v234_v27 = vshll.u32 %v233_v25, 30  ;;  %v453_v31 = vmin.u32 %v134_v29, %v132_v28  ;;  %v257_v14 = vsub.s32 4, %v233_v25  ;;  %vm163_vm5 = vcmp.eq.s32.totalorder %v161_v18, 0 }
  0xf7   :  { %vm166_vm6 = vcmp.eq.s32.totalorder %v161_v18, 2  ;;  %vm162_vm7 = vcmp.lt.s32.totalorder %v161_v18, 2 }
  0xf8   :  { %v235_v5 = vsub.s32 %v231_v21, %v234_v27  ;;  %v136_v33 = vclz %v453_v31  ;;  %v258_v57 = vsel %vm173_vm3, %v257_v14, %v233_v25  ;;  %v37_v25 = vld [vmem:[%s787_s2] sm:$0xff] }
  0xf9   :  { %v260_v21 = vsel %vm754_vm4, 0, %v258_v57 }
  0xfa   :  { %v237_v30 = vsub.s32 0, %v235_v5  ;;  %v454_v35 = vadd.s32 4294967294, %v136_v33  ;;  %v264_v23 = vand.u32 3, %v260_v21  ;;  %v47_v33 = vpop.permute.xlu1 %46 }
  0xfc   :  { %v457_v32 = vmin.u32 %v237_v30, %v235_v5  ;;  %vm455_vm15 = vcmp.lt.s32.totalorder %v454_v35, 0  ;;  %vm266_vm8 = vcmp.eq.s32.totalorder %v264_v23, 0  ;;  %vm269_vm9 = vcmp.eq.s32.totalorder %v264_v23, 2 }
  0xfd   :  { %v139_v37 = vsel %vm455_vm15, 0, %v454_v35  ;;  %vm265_vm11 = vcmp.lt.s32.totalorder %v264_v23, 2 }
  0xfe   :  { %v239_v34 = vclz %v457_v32  ;;  %v144_v38 = vsub.s32 4294967266, %v139_v37  ;;  %v140_v44 = vsub.s32 32, %v139_v37  ;;  %v141_v49 = vshll.u32 %v132_v28, %v139_v37 }
 0x100   :  { %v458_v36 = vadd.s32 4294967294, %v239_v34  ;;  %v145_v45 = vadd.s32 127, %v144_v38  ;;  %v142_v50 = vshrl.u32 %v124_v43, %v140_v44 }
 0x102   :  { %vm459_vm0 = vcmp.lt.s32.totalorder %v458_v36, 0  ;;  %v146_v51 = vshll.u32 %v145_v45, 23  ;;  %v143_v60 = vor.u32 %v142_v50, %v141_v49 }
 0x103   :  { %v242_v40 = vsel %vm459_vm0, 0, %v458_v36  ;;  %v38_v36 = vld [vmem:[%s787_s2 + $0x8] sm:$0xff] }
 0x104   :  { %v247_v41 = vsub.s32 4294967266, %v242_v40  ;;  %v243_v47 = vsub.s32 32, %v242_v40  ;;  %v244_v52 = vshll.u32 %v235_v5, %v242_v40  ;;  %v147_v61 = vor.u32 4788187, %v146_v51  ;;  %v42_v5 = vpop.permute.xlu0 %41 }
 0x105   :  { %v150_v3 = vcvt.s32.f32 %v143_v60  ;;  %v49_v34 = vmul.f32 %v42_v5, %v37_v25  ;;  %v50_v45 = vmul.f32 %v47_v33, %v38_v36 }
 0x106   :  { %v248_v48 = vadd.s32 127, %v247_v41  ;;  %v245_v53 = vshrl.u32 %v227_v46, %v243_v47  ;;  %v148_v2 = vand.u32 2147483647, %v147_v61  ;;  %v391_v46 = vpop.permute.xlu1 %390 }
 0x108   :  { %v249_v54 = vshll.u32 %v248_v48, 23  ;;  %v246_v62 = vor.u32 %v245_v53, %v244_v52  ;;  %v151_v1 = vmul.f32 %v150_v3, %v148_v2  ;;  %v386_v37 = vpop.permute.xlu0 %385 }
 0x10a   :  { %v250_v63 = vor.u32 4788187, %v249_v54  ;;  %v253_v59 = vcvt.s32.f32 %v246_v62  ;;  %v152_v9 = vxor.u32 2147483648, %v151_v1 }
 0x10c   :  { %v251_v4 = vand.u32 2147483647, %v250_v63  ;;  %v153_v10 = vsel %vm70_vm1, %v152_v9, %v151_v1 }
 0x10d   :  { %v156_v11 = vsel %vm744_vm2, %v630_v39, %v153_v10 }
 0x10e   :  { %v254_v8 = vmul.f32 %v253_v59, %v251_v4  ;;  %516 = vcosq.f32 %v156_v11 }
 0x10f   :  { %518 = vsinq.f32 %v156_v11 }
 0x110   :  { %v255_v7 = vxor.u32 2147483648, %v254_v8 }
 0x112   :  { %v256_v12 = vsel %vm173_vm3, %v255_v7, %v254_v8 }
 0x113   :  { %v259_v56 = vsel %vm754_vm4, %v635_v42, %v256_v12 }
 0x114   :  { %520 = vcosq.f32 %v259_v56 }
 0x115   :  { %522 = vsinq.f32 %v259_v56 }
 0x11b   :  { %v517_v15 = vpop.eup %516 }
 0x11c   :  { %v519_v17 = vpop.eup %518  ;;  %v167_v20 = vxor.u32 2147483648, %v517_v15 }
 0x11d   :  { %v164_v19 = vxor.u32 2147483648, %v519_v17 }
 0x11e   :  { %v168_v24 = vsel %vm166_vm6, %v167_v20, %v519_v17 }
 0x11f   :  { %v165_v26 = vsel %vm163_vm5, %v517_v15, %v164_v19 }
 0x120   :  { %v169_v29 = vsel %vm162_vm7, %v165_v26, %v168_v24 }
 0x121   :  { %v521_v0 = vpop.eup %520  ;;  %v170_v32 = vsel %vm160_vm10, nan, %v169_v29 }
 0x122   :  { %v523_v22 = vpop.eup %522  ;;  %v270_v28 = vxor.u32 2147483648, %v521_v0  ;;  %v274_v40 = vmul.f32 %v170_v32, %v49_v34 }
 0x123   :  { %v267_v27 = vxor.u32 2147483648, %v523_v22 }
 0x124   :  { %v271_v31 = vsel %vm269_vm9, %v270_v28, %v523_v22 }
 0x125   :  { %v268_v30 = vsel %vm266_vm8, %v521_v0, %v267_v27 }
 0x126   :  { %v272_v35 = vsel %vm265_vm11, %v268_v30, %v271_v31 }
 0x127   :  { %v273_v43 = vsel %vm263_vm12, nan, %v272_v35 }
 0x128   :  { %v275_v48 = vmul.f32 %v273_v43, %v50_v45 }
 0x1a7   :  { %v436_v38 = vpop.f32.mrf.mxu1 }
 0x1a8   :  { %v437_v41 = vadd.f32 %v436_v38, %v386_v37 }
 0x1a9   :  { %v484_v44 = vpop.f32.mrf.mxu1 }
 0x1aa   :  { %v443_v39 = vmul.f32 %v437_v41, %v274_v40 }
 0x1ab   :  { %v439_v47 = vpop.f32.mrf.mxu1 }
 0x1ac   :  { %446 = vst.msk [vmem:[%s788_s9] sm:$0xff] %vm445_vm13, %v443_v39  ;;  %v440_v49 = vadd.f32 %v439_v47, %v391_v46 }
 0x1ad   :  { %v485_v50 = vpop.f32.mrf.mxu1 }
 0x1ae   :  { %v444_v51 = vmul.f32 %v440_v49, %v275_v48 }
 0x1b0   :  { %447 = vst.msk [vmem:[%s788_s9 + $0x8] sm:$0xff] %vm445_vm13, %v444_v51 }

</bundles_post_ra>
